<compile_context>
chip_gen: v7x
topology: tpu7x:2x2x1
jax: 0.10.0
libtpu: 0.0.40
codegen_flags: <defaults>
</compile_context>

<pallas_src>
import functools
import math

import jax
import jax.numpy as jnp
from jax.experimental import pallas as pl
from jax.experimental.pallas import tpu as pltpu

_LANES = 128
_MAX_TILE_ROWS = 8192                    # rows per grid step (upper bound)
_VMEM_INPUT_BUDGET = 16 * 1024 * 1024    # bytes: 2 inputs x 2 pipeline buffers
_MAX_PACKED_WIDTH = 4096                 # cap for lane-densified neuron width


def _round_up(x, m):
    return (x + m - 1) // m * m


def _detect_tpu():
    """Returns (tensorcores_per_chip, physical_vmem_bytes), conservative fallbacks."""
    vmem_cap = 64 << 20          # v7x lower bound; safe everywhere
    num_tc = 1
    try:
        vmem_cap = int(pltpu.get_tpu_info().vmem_capacity_bytes)
    except Exception:
        pass
    try:
        kind = jax.devices()[0].device_kind.lower()
        if "7" in kind:           # v7x: 2 TensorCores per chip
            num_tc = 2
    except Exception:
        pass
    return num_tc, vmem_cap


# ----------------------------------------------------------------------------
# Kernel: accumulate column partial sums of  y - p * log(y + bias)  over rows.
# ----------------------------------------------------------------------------
def _poisson_partial_kernel(pred_ref, outc_ref, o_ref, acc_ref, *,
                            bias, tile_rows, blocks_per_core,
                            valid_rows, needs_mask):
    c = pl.program_id(0)            # megacore row-range split (parallel)
    k = pl.program_id(1)            # row-block sweep (reduction, arbitrary)

    @pl.when(k == 0)
    def _():
        acc_ref[...] = jnp.zeros_like(acc_ref)

    p = pred_ref[...].astype(jnp.float32)
    y = outc_ref[...].astype(jnp.float32)
    loss = y - p * jnp.log(y + bias)
    width = loss.shape[-1]

    def fold(vals):
        # (tile_rows, W) -> (tile_rows//8, 8, W): vreg-shaped sublane fold,
        # pure VPU adds (no per-step cross-lane / XLU reductions).
        return vals.reshape(tile_rows // 8, 8, width).sum(axis=0)

    if needs_mask:
        # Only the ragged last block of each core's sweep (and the clamped
        # phantom block) pays the per-element compare+select; the bulk of the
        # sweep takes the unmasked branch below.
        row_start = (c * blocks_per_core + k) * tile_rows
        in_bounds = row_start + tile_rows <= valid_rows

        @pl.when(in_bounds)
        def _():
            acc_ref[...] += fold(loss)

        @pl.when(jnp.logical_not(in_bounds))
        def _():
            row_ids = jax.lax.broadcasted_iota(jnp.int32, loss.shape, 0)
            # jnp.where (NOT a multiply): OOB rows hold garbage that may be NaN.
            acc_ref[...] += fold(
                jnp.where(row_start + row_ids < valid_rows, loss, 0.0))
    else:
        acc_ref[...] += fold(loss)

    @pl.when(k == pl.num_programs(1) - 1)
    def _():
        o_ref[...] = acc_ref[...][None, :, :]


# ----------------------------------------------------------------------------
# Pallas launcher on a 2-D (rows, width) view.  Returns unscaled partial sums
# of shape (num_parallel, 8, width); the caller collapses them with jnp.sum.
# ----------------------------------------------------------------------------
def _run_reduce(pred2, outc2, *, bias, max_tile_rows=_MAX_TILE_ROWS):
    assert pred2.shape == outc2.shape and pred2.dtype == outc2.dtype
    rows, width = pred2.shape
    itemsize = pred2.dtype.itemsize
    align = 16 if itemsize == 2 else 8      # sublane tile (bf16 packs x2)

    num_tc, vmem_cap = _detect_tpu()

    # Largest row tile keeping 2 inputs x 2 pipeline buffers inside budget.
    row_bytes = _round_up(width, _LANES) * itemsize
    budget_rows = max(align, _VMEM_INPUT_BUDGET // (4 * row_bytes))
    cap_rows = (rows // align) * align if rows >= align else _round_up(rows, align)
    tile_rows = min(max_tile_rows, budget_rows, cap_rows)
    tile_rows = max(align, (tile_rows // align) * align)

    total_blocks = pl.cdiv(rows, tile_rows)
    # 2-way megacore split only on multi-TensorCore chips (v7x); on v5e/v6e
    # the grid is a serial loop and the split would only add masking work.
    num_parallel = num_tc if (num_tc > 1 and total_blocks >= num_tc) else 1
    bpc = pl.cdiv(total_blocks, num_parallel)            # blocks per core
    needs_clamp = (num_parallel * bpc) != total_blocks   # phantom tail block
    needs_mask = (num_parallel * bpc * tile_rows) != rows

    def in_map(c, k):
        b = c * bpc + k
        if needs_clamp:
            # Phantom block -> re-read the last real block (fully masked to 0).
            b = jnp.minimum(b, total_blocks - 1)
        return (b, 0)

    kernel = functools.partial(
        _poisson_partial_kernel, bias=float(bias), tile_rows=tile_rows,
        blocks_per_core=bpc, valid_rows=rows, needs_mask=needs_mask)

    # Explicit scoped-VMEM limit: keeps the 16 MiB double-buffered input
    # footprint compiling on v5e (16 MiB default scoped) without over-asking
    # on v7x (64 MiB physical).
    in_bytes = 4 * tile_rows * row_bytes
    vmem_limit = min(max(in_bytes + (8 << 20), 16 << 20),
                     max(vmem_cap - (16 << 20), 24 << 20))
    vmem_limit = int(max(vmem_limit, in_bytes + (2 << 20)))

    return pl.pallas_call(
        kernel,
        out_shape=jax.ShapeDtypeStruct((num_parallel, 8, width), jnp.float32),
        grid_spec=pltpu.PrefetchScalarGridSpec(
            num_scalar_prefetch=0,
            grid=(num_parallel, bpc),
            in_specs=[
                pl.BlockSpec((tile_rows, width), in_map),
                pl.BlockSpec((tile_rows, width), in_map),
            ],
            out_specs=pl.BlockSpec((1, 8, width), lambda c, k: (c, 0, 0)),
            scratch_shapes=[pltpu.VMEM((8, width), jnp.float32)],
        ),
        compiler_params=pltpu.CompilerParams(
            dimension_semantics=("parallel", "arbitrary"),
            vmem_limit_bytes=vmem_limit),
    )(pred2, outc2)


# ----------------------------------------------------------------------------
# Public wrapper (matches PoissonLoss.forward semantics)
# ----------------------------------------------------------------------------
def poisson_loss(pred, outcome, *, neuron=False, avg=True, bias=1e-08):
    pred = jnp.asarray(pred)
    outcome = jnp.asarray(outcome)
    assert pred.shape == outcome.shape

    # Stream f32/bf16 inputs as-is; anything else / mismatched -> f32.
    allowed = ("float32", "bfloat16")
    if (pred.dtype.name not in allowed or outcome.dtype.name not in allowed
            or pred.dtype != outcome.dtype):
        pred = pred.astype(jnp.float32)
        outcome = outcome.astype(jnp.float32)

    if not neuron:
        n = pred.size
        pred_f = pred.reshape(-1)
        outc_f = outcome.reshape(-1)
        rows = n // _LANES
        main = rows * _LANES
        total = jnp.float32(0.0)
        if rows > 0:
            partials = _run_reduce(pred_f[:main].reshape(rows, _LANES),
                                   outc_f[:main].reshape(rows, _LANES),
                                   bias=bias)
            total = total + jnp.sum(partials)
        if main < n:
            # <=127-element ragged tail: tiny plain-jnp epilogue instead of a
            # full-array pad copy through HBM.
            pt = pred_f[main:].astype(jnp.float32)
            yt = outc_f[main:].astype(jnp.float32)
            total = total + jnp.sum(yt - pt * jnp.log(yt + bias))
        return total / n if avg else total

    # neuron=True: view(-1, D), reduce over dim 0 -> output shape (D,)
    d = pred.shape[-1]
    pred2 = pred.reshape(-1, d)
    outc2 = outcome.reshape(-1, d)
    n_rows = pred2.shape[0]

    # Lane-densify small / non-multiple-of-128 D: pack g logical rows per
    # physical row so the kernel's last dim is a multiple of 128 lanes.
    if d % _LANES != 0:
        g = _LANES // math.gcd(d, _LANES)
        if g * d > _MAX_PACKED_WIDTH:
            g = 1
    else:
        g = 1
    width = g * d

    phys_rows = n_rows // g
    main_rows = phys_rows * g
    acc = jnp.zeros((d,), jnp.float32)
    if phys_rows > 0:
        partials = _run_reduce(pred2[:main_rows].reshape(phys_rows, width),
                               outc2[:main_rows].reshape(phys_rows, width),
                               bias=bias)
        acc = acc + jnp.sum(partials.reshape(-1, g, d), axis=(0, 1))
    if main_rows < n_rows:
        # < g leftover logical rows: tiny plain-jnp epilogue.
        pt = pred2[main_rows:].astype(jnp.float32)
        yt = outc2[main_rows:].astype(jnp.float32)
        acc = acc + jnp.sum(yt - pt * jnp.log(yt + bias), axis=0)
    return acc / n_rows if avg else acc


def _reference(pred, outcome, *, neuron=False, avg=True, bias=1e-08):
    pred = jnp.asarray(pred, jnp.float32)
    outcome = jnp.asarray(outcome, jnp.float32)
    loss = outcome - pred * jnp.log(outcome + bias)
    if not neuron:
        return loss.mean() if avg else loss.sum()
    loss = loss.reshape(-1, loss.shape[-1])
    return loss.mean(axis=0) if avg else loss.sum(axis=0)


if __name__ == "__main__":
    key = jax.random.PRNGKey(0)
    k1, k2 = jax.random.split(key)
    x_shape = (2, 4, 16, 16)
    pred = jax.random.normal(k1, x_shape, dtype=jnp.float32)
    # Poisson outcomes are non-negative samples.
    outcome = jax.random.uniform(k2, x_shape, dtype=jnp.float32,
                                 minval=0.0, maxval=5.0)

    # Default module config: neuron=False, avg=True.
    loss = poisson_loss(pred, outcome, neuron=False, avg=True)
    jax.block_until_ready(loss)
    ref = _reference(pred, outcome, neuron=False, avg=True)
    assert jnp.allclose(loss, ref, rtol=1e-5, atol=1e-5), (loss, ref)

    # neuron=True path (per-neuron mean over dim 0 of the (-1, D) view),
    # exercises the lane-dense packing (D=16 -> 8 logical rows per 128 lanes).
    loss_n = poisson_loss(pred, outcome, neuron=True, avg=True)
    jax.block_until_ready(loss_n)
    ref_n = _reference(pred, outcome, neuron=True, avg=True)
    assert jnp.allclose(loss_n, ref_n, rtol=1e-5, atol=1e-5), (loss_n, ref_n)

    # Sum (avg=False) variant.
    loss_s = poisson_loss(pred, outcome, neuron=False, avg=False)
    ref_s = _reference(pred, outcome, neuron=False, avg=False)
    assert jnp.allclose(loss_s, ref_s, rtol=1e-4, atol=1e-2), (loss_s, ref_s)

    # Ragged element count (not a multiple of 128): exercises the aligned
    # prefix + tiny jnp tail epilogue (no full-array pad copy).
    y_shape = (3, 5, 7, 11)
    k3, k4 = jax.random.split(k2)
    pred_r = jax.random.normal(k3, y_shape, dtype=jnp.float32)
    outc_r = jax.random.uniform(k4, y_shape, dtype=jnp.float32,
                                minval=0.0, maxval=5.0)
    loss_r = poisson_loss(pred_r, outc_r, neuron=False, avg=True)
    ref_r = _reference(pred_r, outc_r, neuron=False, avg=True)
    assert jnp.allclose(loss_r, ref_r, rtol=1e-5, atol=1e-4), (loss_r, ref_r)

    # bf16 inputs stream as bf16 (no host upcast) and accumulate in f32.
    pred_b = pred.astype(jnp.bfloat16)
    outc_b = outcome.astype(jnp.bfloat16)
    loss_b = poisson_loss(pred_b, outc_b, neuron=False, avg=True)
    ref_b = _reference(pred_b, outc_b, neuron=False, avg=True)
    assert jnp.allclose(loss_b, ref_b, rtol=1e-5, atol=1e-4), (loss_b, ref_b)

    # Force a tiny tile so the multi-block sweep, the (v7x-only) megacore
    # split, and the pl.when-gated ragged-block mask all execute at small size.
    rows = 44
    p3 = jax.random.normal(k3, (rows, _LANES), dtype=jnp.float32)
    y3 = jax.random.uniform(k4, (rows, _LANES), dtype=jnp.float32,
                            minval=0.0, maxval=5.0)
    out3 = _run_reduce(p3, y3, bias=1e-8, max_tile_rows=8)
    jax.block_until_ready(out3)
    ref3 = jnp.sum(y3 - p3 * jnp.log(y3 + 1e-8))
    assert jnp.allclose(jnp.sum(out3), ref3, rtol=1e-5, atol=1e-2), (
        jnp.sum(out3), ref3)

    print("KERNEL_OK")
</pallas_src>

<mosaic_0001>
module attributes {stable_mosaic.version = 11 : i64} {
  func.func @_poisson_partial_kernel(%arg0: i32, %arg1: i32, %arg2: memref<16x128xf32, #tpu.memory_space<vmem>>, %arg3: memref<16x128xf32, #tpu.memory_space<vmem>>, %arg4: memref<1x8x128xf32, #tpu.memory_space<vmem>>, %arg5: memref<8x128xf32, #tpu.memory_space<vmem>>) attributes {dimension_semantics = [#tpu.dimension_semantics<parallel>, #tpu.dimension_semantics<arbitrary>], iteration_bounds = array<i64: 1, 1>, scalar_prefetch = 0 : i64, scratch_operands = 1 : i64, tpu.core_type = #tpu.core_type<tc>, window_params = [{transform_indices = @transform_0, window_bounds = array<i64: 16, 128>}, {transform_indices = @transform_1, window_bounds = array<i64: 16, 128>}, {transform_indices = @transform_2, window_bounds = array<i64: 1, 8, 128>}]} {
    %c0_i32 = arith.constant 0 : i32
    %0 = arith.cmpi eq, %arg1, %c0_i32 : i32
    %1 = arith.extui %0 : i1 to i32
    %c0_i32_0 = arith.constant 0 : i32
    %2 = arith.cmpi ne, %1, %c0_i32_0 : i32
    scf.if %2 {
      %cst_11 = arith.constant 0.000000e+00 : f32
      %18 = vector.broadcast %cst_11 : f32 to vector<8x128xf32>
      %c0_12 = arith.constant 0 : index
      %c0_13 = arith.constant 0 : index
      %19 = vector.load %arg5[%c0_12, %c0_13] : memref<8x128xf32, #tpu.memory_space<vmem>>, vector<8x128xf32>
      tpu.vector_store %arg5[%c0_12, %c0_13], %18 {strides = array<i32>} : memref<8x128xf32, #tpu.memory_space<vmem>>, vector<8x128xf32>,
    } else {
    }
    %c0 = arith.constant 0 : index
    %c0_1 = arith.constant 0 : index
    %3 = vector.load %arg2[%c0, %c0_1] : memref<16x128xf32, #tpu.memory_space<vmem>>, vector<16x128xf32>
    %c0_2 = arith.constant 0 : index
    %c0_3 = arith.constant 0 : index
    %4 = vector.load %arg3[%c0_2, %c0_3] : memref<16x128xf32, #tpu.memory_space<vmem>>, vector<16x128xf32>
    %cst = arith.constant 9.99999993E-9 : f32
    %5 = vector.broadcast %cst : f32 to vector<16x128xf32>
    %6 = arith.addf %4, %5 : vector<16x128xf32>
    %7 = math.log %6 : vector<16x128xf32>
    %8 = arith.mulf %3, %7 : vector<16x128xf32>
    %9 = arith.subf %4, %8 : vector<16x128xf32>
    %c0_4 = arith.constant 0 : index
    %c0_5 = arith.constant 0 : index
    %10 = vector.load %arg5[%c0_4, %c0_5] : memref<8x128xf32, #tpu.memory_space<vmem>>, vector<8x128xf32>
    %11 = vector.shape_cast %9 : vector<16x128xf32> to vector<2x8x128xf32>
    %cst_6 = arith.constant dense<0.000000e+00> : vector<8x128xf32>
    %12 = vector.multi_reduction <add>, %11, %cst_6 [0] : vector<2x8x128xf32> to vector<8x128xf32>
    %13 = arith.addf %10, %12 : vector<8x128xf32>
    %c0_7 = arith.constant 0 : index
    %c0_8 = arith.constant 0 : index
    %14 = vector.load %arg5[%c0_7, %c0_8] : memref<8x128xf32, #tpu.memory_space<vmem>>, vector<8x128xf32>
    tpu.vector_store %arg5[%c0_7, %c0_8], %13 {strides = array<i32>} : memref<8x128xf32, #tpu.memory_space<vmem>>, vector<8x128xf32>,
    %c0_i32_9 = arith.constant 0 : i32
    %15 = arith.cmpi eq, %arg1, %c0_i32_9 : i32
    %16 = arith.extui %15 : i1 to i32
    %c0_i32_10 = arith.constant 0 : i32
    %17 = arith.cmpi ne, %16, %c0_i32_10 : i32
    scf.if %17 {
      %c0_11 = arith.constant 0 : index
      %c0_12 = arith.constant 0 : index
      %18 = vector.load %arg5[%c0_11, %c0_12] : memref<8x128xf32, #tpu.memory_space<vmem>>, vector<8x128xf32>
      %19 = vector.shape_cast %18 : vector<8x128xf32> to vector<1x8x128xf32>
      %c0_13 = arith.constant 0 : index
      %c0_14 = arith.constant 0 : index
      %c0_15 = arith.constant 0 : index
      %20 = vector.load %arg4[%c0_13, %c0_14, %c0_15] : memref<1x8x128xf32, #tpu.memory_space<vmem>>, vector<1x8x128xf32>
      tpu.vector_store %arg4[%c0_13, %c0_14, %c0_15], %19 {strides = array<i32>} : memref<1x8x128xf32, #tpu.memory_space<vmem>>, vector<1x8x128xf32>,
    } else {
    }
    return
  }
  func.func @transform_0(%arg0: i32, %arg1: i32) -> (i32, i32) {
    %c1_i32 = arith.constant 1 : i32
    %0 = arith.muli %arg0, %c1_i32 : i32
    %1 = arith.addi %0, %arg1 : i32
    %c0_i32 = arith.constant 0 : i32
    %c0_i32_0 = arith.constant 0 : i32
    return %1, %c0_i32 : i32, i32
  }
  func.func @transform_1(%arg0: i32, %arg1: i32) -> (i32, i32) {
    %c1_i32 = arith.constant 1 : i32
    %0 = arith.muli %arg0, %c1_i32 : i32
    %1 = arith.addi %0, %arg1 : i32
    %c0_i32 = arith.constant 0 : i32
    %c0_i32_0 = arith.constant 0 : i32
    return %1, %c0_i32 : i32, i32
  }
  func.func @transform_2(%arg0: i32, %arg1: i32) -> (i32, i32, i32) {
    %c0_i32 = arith.constant 0 : i32
    %c0_i32_0 = arith.constant 0 : i32
    %c0_i32_1 = arith.constant 0 : i32
    return %arg0, %c0_i32, %c0_i32_0 : i32, i32, i32
  }
}

</mosaic_0001>

<bundles_post_ra>
// kernel: tpu_custom_call.1
= control target key start
LH: loop header
LB: loop body
LE: loop exit
PB: predicated region body
PF: predicated region fallthrough
CT: control target
= control target key end

     0   :  { %7 = vsyncpa [#allocation4], 0  ;;  %s233_s0 = inlined_call_operand.hbm [shape: f32[16,128], index: 0, kind: input, shape index: {}]   ;;  %s234_s1 = inlined_call_operand.hbm [shape: f32[16,128], index: 1, kind: input, shape index: {}]   ;;  %s235_s2 = inlined_call_operand.hbm [shape: f32[1,8,128], index: 2, kind: output, shape index: {}]  }
   0x1   :  { %8 = vsyncpa [#allocation7], 0 }
   0x2   :  { %9 = vsyncpa [#allocation5], 0  ;;  %s177_s9 = smov [#allocation3]   ;;  %s105_s13 = scalar_lea.hbm %s233_s0, 256 }
   0x3   :  { %s19_s10 = sshll.u32 %s177_s9, 4  ;;  %p106_p0 = scmp.ne.s32.totalorder %s233_s0, %s105_s13  ;;  %s20_s10 = int_to_ptr.vmem [resolvable:$true] %s19_s10 }
   0x4   :  { %p109_p1 = scmp.lt.u32.totalorder %s105_s13, %s233_s0 }
   0x6   :  { %p111_p2 = pnand %p109_p1, %p106_p0 }
   0x8   :  { %114 = shalt.err (!%p111_p2)
}
   0x9   :  { %s115_s18 = scalar_lea.vmem %s20_s10, 256  ;;  %p120_p4 = scmp.lt.s32.totalorder %s20_s10, %s20_s10 }
   0xa   :  { %p116_p3 = scmp.ne.s32.totalorder %s20_s10, %s115_s18  ;;  %p121_p5 = scmp.lt.s32.totalorder %s115_s18, %s115_s18 }
   0xc   :  { %p122_p6 = por %p121_p5, %p120_p4 }
   0xe   :  { %p123_p7 = pnand %p122_p6, %p116_p3 }
  0x10   :  { %126 = shalt.err (!%p123_p7)
}
  0x11   :  { %s178_s19 = smov 128   ;;  %s179_s20 = smov 8  }
  0x12   :  { %25 = dma.hbm_to_vmem [thread:$0]  %s233_s0, 256, %s20_s10, [#allocation4], %s178_s19, %s178_s19, %s179_s20  }
  0x13   :  { %s180_s23 = smov [#allocation6]   ;;  %s127_s27 = scalar_lea.hbm %s234_s1, 256 }
  0x14   :  { %s35_s24 = sshll.u32 %s180_s23, 4  ;;  %p128_p8 = scmp.ne.s32.totalorder %s234_s1, %s127_s27  ;;  %s36_s24 = int_to_ptr.vmem [resolvable:$true] %s35_s24 }
  0x15   :  { %p131_p9 = scmp.lt.u32.totalorder %s127_s27, %s234_s1 }
  0x17   :  { %p133_p10 = pnand %p131_p9, %p128_p8 }
  0x19   :  { %136 = shalt.err (!%p133_p10)
}
  0x1a   :  { %s137_s4 = scalar_lea.vmem %s36_s24, 256  ;;  %p142_p12 = scmp.lt.s32.totalorder %s36_s24, %s36_s24 }
  0x1b   :  { %p138_p11 = scmp.ne.s32.totalorder %s36_s24, %s137_s4  ;;  %p143_p13 = scmp.lt.s32.totalorder %s137_s4, %s137_s4 }
  0x1d   :  { %p144_p0 = por %p143_p13, %p142_p12 }
  0x1f   :  { %p145_p1 = pnand %p144_p0, %p138_p11 }
  0x21   :  { %148 = shalt.err (!%p145_p1)
}
  0x22   :  { %41 = dma.hbm_to_vmem [thread:$0]  %s234_s1, 256, %s36_s24, [#allocation7], %s178_s19, %s178_s19, %s179_s20  }
  0x23   :  { %171 = dma.done.wait [#allocation4], 256  }
  0x24   :  { %172 = vsyncadd [#allocation4], 4294967040 }
  0x25   :  { %173 = dma.done.wait [#allocation7], 256  }
  0x26   :  { %174 = vsyncadd [#allocation7], 4294967040  ;;  %v59_v0 = vld [vmem:[#allocation6] sm:$0xff]  ;;  %v60_v1 = vld [vmem:[#allocation6 + $0x8] sm:$0xff]  ;;  %s181_s1 = smov [#allocation8]  }
  0x27   :  { %v61_v2 = vadd.f32 1e-08, %v59_v0  ;;  %v62_v3 = vadd.f32 1e-08, %v60_v1  ;;  %v57_v5 = vld [vmem:[#allocation3] sm:$0xff]  ;;  %v58_v7 = vld [vmem:[#allocation3 + $0x8] sm:$0xff] }
  0x28   :  { %s86_s6 = sshll.u32 %s181_s1, 4  ;;  %s87_s6 = int_to_ptr.vmem [resolvable:$true] %s86_s6 }
  0x29   :  { %101 = vlog2.f32 %v61_v2  ;;  %s149_s7 = scalar_lea.vmem %s87_s6, 128  ;;  %p154_p3 = scmp.lt.s32.totalorder %s87_s6, %s87_s6 }
  0x2a   :  { %103 = vlog2.f32 %v62_v3  ;;  %p150_p2 = scmp.ne.s32.totalorder %s87_s6, %s149_s7  ;;  %p155_p4 = scmp.lt.s32.totalorder %s149_s7, %s149_s7 }
  0x2c   :  { %p156_p5 = por %p155_p4, %p154_p3 }
  0x2e   :  { %p157_p6 = pnand %p156_p5, %p150_p2 }
  0x33   :  { %v102_v4 = vpop.eup %101 }
  0x34   :  { %v104_v6 = vpop.eup %103  ;;  %v64_v8 = vmul.f32 0.6931472, %v102_v4 }
  0x35   :  { %v66_v9 = vmul.f32 0.6931472, %v104_v6 }
  0x36   :  { %v67_v10 = vmul.f32 %v64_v8, %v57_v5 }
  0x37   :  { %v68_v11 = vmul.f32 %v66_v9, %v58_v7 }
  0x38   :  { %v69_v12 = vsub.f32 %v59_v0, %v67_v10 }
  0x39   :  { %v70_v13 = vsub.f32 %v60_v1, %v68_v11 }
  0x3b   :  { %v72_v14 = vadd.f32 %v70_v13, %v69_v12 }
  0x3d   :  { %79 = vst [vmem:[#allocation8] sm:$0xff] %v72_v14 }
  0x3e   :  { %160 = shalt.err (!%p157_p6)
}
  0x3f   :  { %s161_s10 = scalar_lea.hbm %s235_s2, 128 }
  0x40   :  { %p162_p7 = scmp.ne.s32.totalorder %s235_s2, %s161_s10  ;;  %p165_p8 = scmp.lt.u32.totalorder %s161_s10, %s235_s2 }
  0x42   :  { %p167_p9 = pnand %p165_p8, %p162_p7 }
  0x44   :  { %170 = shalt.err (!%p167_p9)
}
  0x45   :  { %89 = dma.vmem_to_hbm [thread:$0]  %s87_s6, 128, %s235_s2, [#allocation5]  }
  0x46   :  { %175 = dma.done.wait [#allocation5], 128  }
  0x47   :  { %176 = vsyncadd [#allocation5], 4294967168 }
  0x48   :  { %93 = vsyncpa [#allocation4], 1 }
  0x49   :  { %94 = vsyncpa [#allocation7], 1 }
  0x4a   :  { %95 = vsyncpa [#allocation5], 1 }

</bundles_post_ra>
